<compile_context>
chip_gen: v7x
topology: tpu7x:2x2x1
jax: 0.10.0
libtpu: 0.0.40
codegen_flags: <defaults>
</compile_context>

<pallas_src>
import functools

import numpy as np
import jax
import jax.numpy as jnp
from jax.experimental import pallas as pl
from jax.experimental.pallas import tpu as pltpu


def _build_compaction_masks(h, w, hw_pad):
    """Per-round lane masks for the in-kernel crop/compaction.

    After pooling, the value for output element (r, c) (r < H-1, c < W-1)
    lives at lane r*W + c of its plane row and must end at lane r*(W-1) + c,
    i.e. move left by exactly r lanes.  Round k of the log-shifter moves every
    element whose row index has bit k set left by 2**k lanes; masks[k][j] == 1
    marks the lanes that receive a moved element in round k (take the
    rolled-by-2**k value there).  Source lanes grow strictly faster than the
    shifts, so no surviving value is ever clobbered while still needed.
    """
    oh, ow = h - 1, w - 1
    nbits = max(1, int(oh - 1).bit_length())
    masks = np.zeros((nbits, hw_pad), dtype=np.int32)
    r = np.repeat(np.arange(oh), ow)
    c = np.tile(np.arange(ow), oh)
    pos = r * w + c                     # current lane of each surviving value
    for k in range(nbits):
        move = ((r >> k) & 1).astype(bool)
        newpos = pos - (1 << k)
        masks[k, newpos[move]] = 1
        pos = np.where(move, newpos, pos)
    # Sanity (trace time, numpy): every value ends exactly at its output lane.
    assert np.array_equal(pos, r * ow + c)
    return masks


def _maxpool2x2_s1_kernel(mask_ref, x_ref, o_ref, *, w, out_lanes):
    # x_ref: (tile_p, hw_pad)   one flattened plane per sublane row, lane-dense.
    # o_ref: (tile_p, (h-1)*(w-1))   fully compacted output (no wrapper crop).
    x = x_ref[...]
    hw_pad = x.shape[-1]
    # 2x2 stride-1 max: horizontal then vertical neighbour via circular lane
    # rolls (roll by hw_pad - s  ==  roll by -s, i.e. result[j] = src[j + s]).
    m = jnp.maximum(x, pltpu.roll(x, shift=hw_pad - 1, axis=1))
    m = jnp.maximum(m, pltpu.roll(m, shift=hw_pad - w, axis=1))
    # In-kernel crop: shift the values of plane row r left by r lanes with a
    # log-step shifter, compacting out the last column of every plane row and
    # the (wrap-contaminated) last plane row in one pass.
    nbits = mask_ref.shape[0]
    for k in range(nbits):
        rolled = pltpu.roll(m, shift=hw_pad - (1 << k), axis=1)
        take = mask_ref[pl.ds(k, 1), :] > 0          # (1, hw_pad), broadcast
        m = jnp.where(take, rolled, m)
    o_ref[...] = m[:, :out_lanes]


def maxpool2d_k2_s1(x):
    """MaxPool2d(kernel_size=2, stride=1, padding=0) on an NCHW tensor."""
    n, c, h, w = x.shape
    assert h >= 2 and w >= 2, "spatial dims must be >= kernel_size"
    oh, ow = h - 1, w - 1
    p = n * c
    hw = h * w
    itemsize = jnp.dtype(x.dtype).itemsize

    # Lane padding: keep every packed plane row a multiple of 128 lanes so
    # loads / rolls / stores stay vreg-aligned for odd spatial sizes.
    hw_pad = ((hw + 127) // 128) * 128
    out_lanes = oh * ow

    x_packed = x.reshape(p, hw)
    if hw_pad != hw:
        x_packed = jnp.pad(x_packed, ((0, 0), (0, hw_pad - hw)))

    masks = jnp.asarray(_build_compaction_masks(h, w, hw_pad))
    nbits = masks.shape[0]

    # --- Tile sizing -------------------------------------------------------
    # dtype-aware sublane multiple: packed dtypes need 16 (bf16) / 32 (int8)
    # rows per block to keep whole packed tiles and unmasked stores.
    sub_mult = {4: 8, 2: 16, 1: 32}.get(itemsize, 8)
    row_bytes = hw_pad * itemsize
    budget_bytes = 4 * 1024 * 1024          # ~85%+ of HBM roofline per docs
    tile_p = max(sub_mult,
                 (budget_bytes // max(row_bytes, 1)) // sub_mult * sub_mult)
    # v7x megacore: keep the "parallel" grid axis >= 2 steps whenever the
    # plane count allows it so both TensorCores stream DMA.
    if p > sub_mult:
        half = -(-p // 2)
        tile_p = min(tile_p, max(sub_mult, -(-half // sub_mult) * sub_mult))
    if tile_p >= p:
        tile_p = p                          # full-extent block is always legal

    # --- VMEM budget guard (derived from the actual blocks) ----------------
    block_bytes = (tile_p * hw_pad + tile_p * out_lanes) * itemsize \
                  + nbits * hw_pad * 4
    needed = 2 * block_bytes + 4 * 1024 * 1024     # double-buffered + headroom
    vmem_cap = 48 * 1024 * 1024             # safe on v5e/v6e (128 MiB) and v7x (64 MiB)
    if needed > vmem_cap:
        # TODO(synk): halo-aware H-band tiling for planes too large for a
        # single minimum-sublane block; not needed for these problem sizes.
        raise NotImplementedError(
            f"plane of {hw} elements too large for a single VMEM block")
    vmem_limit = min(vmem_cap, max(needed, 16 * 1024 * 1024))

    grid = (pl.cdiv(p, tile_p),)

    out_packed = pl.pallas_call(
        functools.partial(_maxpool2x2_s1_kernel, w=w, out_lanes=out_lanes),
        out_shape=jax.ShapeDtypeStruct((p, out_lanes), x.dtype),
        grid_spec=pltpu.PrefetchScalarGridSpec(
            num_scalar_prefetch=0,
            grid=grid,
            in_specs=[
                pl.BlockSpec((nbits, hw_pad), lambda i: (0, 0)),
                pl.BlockSpec((tile_p, hw_pad), lambda i: (i, 0)),
            ],
            out_specs=pl.BlockSpec((tile_p, out_lanes), lambda i: (i, 0)),
        ),
        compiler_params=pltpu.CompilerParams(
            dimension_semantics=("parallel",),
            vmem_limit_bytes=vmem_limit,
        ),
    )(masks, x_packed)

    # Output is already fully cropped/compacted: reshape only (free).
    return out_packed.reshape(n, c, oh, ow)


def _ref_maxpool2x2_s1(x):
    return jnp.maximum(
        jnp.maximum(x[:, :, :-1, :-1], x[:, :, :-1, 1:]),
        jnp.maximum(x[:, :, 1:, :-1], x[:, :, 1:, 1:]),
    )


if __name__ == "__main__":
    key = jax.random.PRNGKey(0)

    # Primary shape consistent with the module: batch=2, channels=4, 16x16.
    x = jax.random.normal(key, (2, 4, 16, 16), dtype=jnp.float32)
    y = maxpool2d_k2_s1(x)
    jax.block_until_ready(y)
    assert y.shape == (2, 4, 15, 15), y.shape
    assert jnp.allclose(y, _ref_maxpool2x2_s1(x)), "mismatch vs reference (16x16)"

    # Extra coverage flagged by the review: non-square / non-128-multiple
    # spatial dims (lane-padding path) and plane count not a multiple of the
    # tile (partial trailing block, 2-step grid for v7x megacore).
    for shape in ((2, 4, 9, 13), (3, 4, 16, 16)):
        xs = jax.random.normal(jax.random.PRNGKey(1), shape, dtype=jnp.float32)
        ys = maxpool2d_k2_s1(xs)
        jax.block_until_ready(ys)
        assert jnp.allclose(ys, _ref_maxpool2x2_s1(xs)), f"mismatch at {shape}"

    print("KERNEL_OK")
</pallas_src>

<mosaic_0001>
module attributes {stable_mosaic.version = 11 : i64} {
  func.func @_maxpool2x2_s1_kernel(%arg0: i32, %arg1: memref<4x256xi32, #tpu.memory_space<vmem>>, %arg2: memref<8x256xf32, #tpu.memory_space<vmem>>, %arg3: memref<8x225xf32, #tpu.memory_space<vmem>>) attributes {dimension_semantics = [#tpu.dimension_semantics<parallel>], iteration_bounds = array<i64: 1>, scalar_prefetch = 0 : i64, scratch_operands = 0 : i64, tpu.core_type = #tpu.core_type<tc>, window_params = [{pipeline_mode = #tpu.pipeline_mode<synchronous>, transform_indices = @transform_0, window_bounds = array<i64: 4, 256>}, {transform_indices = @transform_1, window_bounds = array<i64: 8, 256>}, {transform_indices = @transform_2, window_bounds = array<i64: 8, 225>}]} {
    %c0 = arith.constant 0 : index
    %c0_0 = arith.constant 0 : index
    %0 = vector.load %arg2[%c0, %c0_0] : memref<8x256xf32, #tpu.memory_space<vmem>>, vector<8x256xf32>
    %c255_i32 = arith.constant 255 : i32
    %1 = tpu.dynamic_rotate %0 by %c255_i32 dim 1 : vector<8x256xf32>, i32 -> vector<8x256xf32>
    %2 = arith.maximumf %0, %1 : vector<8x256xf32>
    %c240_i32 = arith.constant 240 : i32
    %3 = tpu.dynamic_rotate %2 by %c240_i32 dim 1 : vector<8x256xf32>, i32 -> vector<8x256xf32>
    %4 = arith.maximumf %2, %3 : vector<8x256xf32>
    %c255_i32_1 = arith.constant 255 : i32
    %5 = tpu.dynamic_rotate %4 by %c255_i32_1 dim 1 : vector<8x256xf32>, i32 -> vector<8x256xf32>
    %c0_2 = arith.constant 0 : index
    %c0_3 = arith.constant 0 : index
    %6 = vector.load %arg1[%c0_2, %c0_3] : memref<4x256xi32, #tpu.memory_space<vmem>>, vector<1x256xi32>
    %c0_i32 = arith.constant 0 : i32
    %7 = vector.broadcast %c0_i32 : i32 to vector<1x256xi32>
    %8 = arith.cmpi sgt, %6, %7 : vector<1x256xi32>
    %9 = vector.shape_cast %8 : vector<1x256xi1> to vector<1x256xi1>
    %10 = vector.broadcast %9 : vector<1x256xi1> to vector<8x256xi1>
    %11 = arith.select %10, %5, %4 : vector<8x256xi1>, vector<8x256xf32>
    %c254_i32 = arith.constant 254 : i32
    %12 = tpu.dynamic_rotate %11 by %c254_i32 dim 1 : vector<8x256xf32>, i32 -> vector<8x256xf32>
    %c1 = arith.constant 1 : index
    %c0_4 = arith.constant 0 : index
    %13 = vector.load %arg1[%c1, %c0_4] : memref<4x256xi32, #tpu.memory_space<vmem>>, vector<1x256xi32>
    %c0_i32_5 = arith.constant 0 : i32
    %14 = vector.broadcast %c0_i32_5 : i32 to vector<1x256xi32>
    %15 = arith.cmpi sgt, %13, %14 : vector<1x256xi32>
    %16 = vector.shape_cast %15 : vector<1x256xi1> to vector<1x256xi1>
    %17 = vector.broadcast %16 : vector<1x256xi1> to vector<8x256xi1>
    %18 = arith.select %17, %12, %11 : vector<8x256xi1>, vector<8x256xf32>
    %c252_i32 = arith.constant 252 : i32
    %19 = tpu.dynamic_rotate %18 by %c252_i32 dim 1 : vector<8x256xf32>, i32 -> vector<8x256xf32>
    %c2 = arith.constant 2 : index
    %c0_6 = arith.constant 0 : index
    %20 = vector.load %arg1[%c2, %c0_6] : memref<4x256xi32, #tpu.memory_space<vmem>>, vector<1x256xi32>
    %c0_i32_7 = arith.constant 0 : i32
    %21 = vector.broadcast %c0_i32_7 : i32 to vector<1x256xi32>
    %22 = arith.cmpi sgt, %20, %21 : vector<1x256xi32>
    %23 = vector.shape_cast %22 : vector<1x256xi1> to vector<1x256xi1>
    %24 = vector.broadcast %23 : vector<1x256xi1> to vector<8x256xi1>
    %25 = arith.select %24, %19, %18 : vector<8x256xi1>, vector<8x256xf32>
    %c248_i32 = arith.constant 248 : i32
    %26 = tpu.dynamic_rotate %25 by %c248_i32 dim 1 : vector<8x256xf32>, i32 -> vector<8x256xf32>
    %c3 = arith.constant 3 : index
    %c0_8 = arith.constant 0 : index
    %27 = vector.load %arg1[%c3, %c0_8] : memref<4x256xi32, #tpu.memory_space<vmem>>, vector<1x256xi32>
    %c0_i32_9 = arith.constant 0 : i32
    %28 = vector.broadcast %c0_i32_9 : i32 to vector<1x256xi32>
    %29 = arith.cmpi sgt, %27, %28 : vector<1x256xi32>
    %30 = vector.shape_cast %29 : vector<1x256xi1> to vector<1x256xi1>
    %31 = vector.broadcast %30 : vector<1x256xi1> to vector<8x256xi1>
    %32 = arith.select %31, %26, %25 : vector<8x256xi1>, vector<8x256xf32>
    %33 = vector.extract_strided_slice %32 {offsets = [0, 0], sizes = [8, 225], strides = [1, 1]} : vector<8x256xf32> to vector<8x225xf32>
    %c0_10 = arith.constant 0 : index
    %c0_11 = arith.constant 0 : index
    %34 = vector.load %arg3[%c0_10, %c0_11] : memref<8x225xf32, #tpu.memory_space<vmem>>, vector<8x225xf32>
    tpu.vector_store %arg3[%c0_10, %c0_11], %33 {strides = array<i32>} : memref<8x225xf32, #tpu.memory_space<vmem>>, vector<8x225xf32>,
    return
  }
  func.func @transform_0(%arg0: i32) -> (i32, i32) {
    %c0_i32 = arith.constant 0 : i32
    %c0_i32_0 = arith.constant 0 : i32
    %c0_i32_1 = arith.constant 0 : i32
    return %c0_i32, %c0_i32_0 : i32, i32
  }
  func.func @transform_1(%arg0: i32) -> (i32, i32) {
    %c0_i32 = arith.constant 0 : i32
    %c0_i32_0 = arith.constant 0 : i32
    return %arg0, %c0_i32 : i32, i32
  }
  func.func @transform_2(%arg0: i32) -> (i32, i32) {
    %c0_i32 = arith.constant 0 : i32
    %c0_i32_0 = arith.constant 0 : i32
    return %arg0, %c0_i32 : i32, i32
  }
}

</mosaic_0001>

<bundles_post_ra>
// kernel: tpu_custom_call.1
= control target key start
LH: loop header
LB: loop body
LE: loop exit
PB: predicated region body
PF: predicated region fallthrough
CT: control target
= control target key end

     0   :  { %7 = vsyncpa [#allocation3], 0  ;;  %s323_s0 = inlined_call_operand.hbm [shape: s32[4,256], index: 0, kind: input, shape index: {}]   ;;  %s324_s1 = inlined_call_operand.hbm [shape: f32[8,256], index: 1, kind: input, shape index: {}]   ;;  %s325_s2 = inlined_call_operand.hbm [shape: f32[8,225], index: 2, kind: output, shape index: {}]  }
   0x1   :  { %8 = vsyncpa [#allocation6], 0 }
   0x2   :  { %9 = vsyncpa [#allocation4], 0  ;;  %s248_s9 = smov [#allocation2]   ;;  %s249_s11 = smov [#allocation5]  }
   0x3   :  { %s16_s10 = sshll.u32 %s248_s9, 4  ;;  %s26_s12 = sshll.u32 %s249_s11, 4  ;;  %s17_s10 = int_to_ptr.vmem [resolvable:$true] %s16_s10  ;;  %s27_s12 = int_to_ptr.vmem [resolvable:$true] %s26_s12 }
   0x4   :  { %s176_s15 = scalar_lea.hbm %s323_s0, 128 }
   0x5   :  { %p177_p0 = scmp.ne.s32.totalorder %s323_s0, %s176_s15  ;;  %p180_p1 = scmp.lt.u32.totalorder %s176_s15, %s323_s0 }
   0x7   :  { %p182_p2 = pnand %p180_p1, %p177_p0 }
   0x9   :  { %185 = shalt.err (!%p182_p2)
}
   0xa   :  { %s186_s20 = scalar_lea.vmem %s17_s10, 128  ;;  %p191_p4 = scmp.lt.s32.totalorder %s17_s10, %s17_s10 }
   0xb   :  { %p187_p3 = scmp.ne.s32.totalorder %s17_s10, %s186_s20  ;;  %p192_p5 = scmp.lt.s32.totalorder %s186_s20, %s186_s20 }
   0xd   :  { %p193_p6 = por %p192_p5, %p191_p4 }
   0xf   :  { %p194_p7 = pnand %p193_p6, %p187_p3 }
  0x11   :  { %197 = shalt.err (!%p194_p7)
}
  0x12   :  { %19 = dma.hbm_to_vmem [thread:$0]  %s323_s0, 128, %s17_s10, [#allocation3]  }
  0x13   :  { %s198_s25 = scalar_lea.hbm %s324_s1, 256 }
  0x14   :  { %p199_p8 = scmp.ne.s32.totalorder %s324_s1, %s198_s25  ;;  %p202_p9 = scmp.lt.u32.totalorder %s198_s25, %s324_s1 }
  0x16   :  { %p204_p10 = pnand %p202_p9, %p199_p8 }
  0x18   :  { %207 = shalt.err (!%p204_p10)
}
  0x19   :  { %s208_s30 = scalar_lea.vmem %s27_s12, 256  ;;  %p213_p12 = scmp.lt.s32.totalorder %s27_s12, %s27_s12 }
  0x1a   :  { %p209_p11 = scmp.ne.s32.totalorder %s27_s12, %s208_s30  ;;  %p214_p13 = scmp.lt.s32.totalorder %s208_s30, %s208_s30 }
  0x1c   :  { %p215_p0 = por %p214_p13, %p213_p12 }
  0x1e   :  { %p216_p1 = pnand %p215_p0, %p209_p11 }
  0x20   :  { %219 = shalt.err (!%p216_p1)
}
  0x21   :  { %29 = dma.hbm_to_vmem [thread:$0]  %s324_s1, 256, %s27_s12, [#allocation6]  }
  0x22   :  { %242 = dma.done.wait [#allocation3], 128  }
  0x23   :  { %243 = vsyncadd [#allocation3], 4294967168 }
  0x24   :  { %244 = dma.done.wait [#allocation6], 256  }
  0x25   :  { %245 = vsyncadd [#allocation6], 4294967040  ;;  %v36_v0 = vld [vmem:[#allocation5] sm:$0xff]  ;;  %s250_s4 = smov 127   ;;  %v37_v1 = vld [vmem:[#allocation5 + $0x8] sm:$0xff]  ;;  %v42_v2 = vlaneseq  ;;  %s251_s1 = smov 112  }
  0x26   :  { %38 = vrot.lane.b32.xlu0 %v36_v0, %s250_s4  ;;  %v64_v16 = vld [vmem:[#allocation2] ss:$4 sm:$0x3]  ;;  %v252_v20 = vmov 0   ;;  %s253_s5 = smov 126   ;;  %s254_s6 = smov 124  }
  0x27   :  { %v296_v3 = vand.u32 127, %v42_v2  ;;  %v68_v17 = vshrl.u32 %v42_v2, 7  ;;  %vm65_vm2 = vcmp.gt.s32.totalorder %v64_v16, 0  ;;  %v87_v30 = vld [vmem:[#allocation2 + $0x1] ss:$4 sm:$0x3] }
  0x28   :  { %v66_v21 = vsel %vm65_vm2, 1, %v252_v20  ;;  %vm88_vm5 = vcmp.gt.s32.totalorder %v87_v30, 0  ;;  %v110_v40 = vld [vmem:[#allocation2 + $0x2] ss:$4 sm:$0x3]  ;;  %s255_s7 = smov 120  }
  0x29   :  { %vm44_vm0 = vcmp.lt.s32.totalorder %v296_v3, 127  ;;  %vm53_vm1 = vcmp.lt.s32.totalorder %v296_v3, 112  ;;  %v73_v18 = vsub.s32 1, %v68_v17  ;;  %v69_v19 = vsub.s32 0, %v68_v17  ;;  %s256_s8 = smov [#allocation7]  }
  0x2a   :  { %40 = vrot.lane.b32.xlu0 %v37_v1, %s250_s4  ;;  %v89_v31 = vsel %vm88_vm5, 1, %v252_v20  ;;  %vm83_vm6 = vcmp.lt.s32.totalorder %v296_v3, 126  ;;  %vm111_vm9 = vcmp.gt.s32.totalorder %v110_v40, 0  ;;  %vm106_vm10 = vcmp.lt.s32.totalorder %v296_v3, 124  ;;  %s157_s9 = sshll.u32 %s256_s8, 4  ;;  %s158_s9 = int_to_ptr.vmem [resolvable:$true] %s157_s9 }
  0x2b   :  { %v74_v22 = vrot.slane %v66_v21, %v73_v18  ;;  %v70_v23 = vrot.slane %v66_v21, %v69_v19  ;;  %v97_v32 = vrot.slane %v89_v31, %v73_v18  ;;  %v93_v33 = vrot.slane %v89_v31, %v69_v19  ;;  %v133_v50 = vld [vmem:[#allocation2 + $0x3] ss:$4 sm:$0x3]  ;;  %s220_s10 = scalar_lea.vmem %s158_s9, 256  ;;  %p225_p3 = scmp.lt.s32.totalorder %s158_s9, %s158_s9 }
  0x2c   :  { %v112_v41 = vsel %vm111_vm9, 1, %v252_v20  ;;  %vm134_vm13 = vcmp.gt.s32.totalorder %v133_v50, 0  ;;  %vm129_vm14 = vcmp.lt.s32.totalorder %v296_v3, 120  ;;  %p221_p2 = scmp.ne.s32.totalorder %s158_s9, %s220_s10  ;;  %p226_p4 = scmp.lt.s32.totalorder %s220_s10, %s220_s10 }
  0x2d   :  { %vm76_vm3 = vcmp.eq.s32.totalorder %v74_v22, 1  ;;  %vm75_vm4 = vcmp.eq.s32.totalorder %v70_v23, 1  ;;  %vm99_vm7 = vcmp.eq.s32.totalorder %v97_v32, 1  ;;  %vm98_vm8 = vcmp.eq.s32.totalorder %v93_v33, 1 }
  0x2e   :  { %v120_v42 = vrot.slane %v112_v41, %v73_v18  ;;  %v116_v43 = vrot.slane %v112_v41, %v69_v19  ;;  %v135_v51 = vsel %vm134_vm13, 1, %v252_v20  ;;  %p227_p5 = por %p226_p4, %p225_p3 }
  0x2f   :  { %v139_v52 = vrot.slane %v135_v51, %v69_v19  ;;  %v143_v53 = vrot.slane %v135_v51, %v73_v18 }
  0x30   :  { %vm122_vm11 = vcmp.eq.s32.totalorder %v120_v42, 1  ;;  %vm121_vm12 = vcmp.eq.s32.totalorder %v116_v43, 1  ;;  %p228_p6 = pnand %p227_p5, %p221_p2 }
  0x31   :  { %vm144_vm15 = vcmp.eq.s32.totalorder %v139_v52, 1 }
  0x98   :  { %v39_v4 = vpop.permute.xlu0 %38 }
  0x9c   :  { %v41_v5 = vpop.permute.xlu0 %40 }
  0x9d   :  { %v45_v6 = vsel %vm44_vm0, %v39_v4, %v41_v5  ;;  %v46_v8 = vsel %vm44_vm0, %v41_v5, %v39_v4 }
  0x9e   :  { %v47_v7 = vmax.f32 %v36_v0, %v45_v6  ;;  %v48_v9 = vmax.f32 %v37_v1, %v46_v8 }
  0xa0   :  { %49 = vrot.lane.b32.xlu1 %v47_v7, %s251_s1 }
  0xa4   :  { %51 = vrot.lane.b32.xlu1 %v48_v9, %s251_s1 }
 0x112   :  { %v50_v10 = vpop.permute.xlu1 %49 }
 0x116   :  { %v52_v11 = vpop.permute.xlu1 %51 }
 0x117   :  { %v54_v12 = vsel %vm53_vm1, %v50_v10, %v52_v11  ;;  %v55_v13 = vsel %vm53_vm1, %v52_v11, %v50_v10  ;;  %vm149_vm1 = vcmask 793600  }
 0x118   :  { %v56_v14 = vmax.f32 %v47_v7, %v54_v12  ;;  %v57_v15 = vmax.f32 %v48_v9, %v55_v13 }
 0x11a   :  { %60 = vrot.lane.b32.xlu1 %v57_v15, %s250_s4  ;;  %58 = vrot.lane.b32.xlu0 %v56_v14, %s250_s4 }
 0x18c   :  { %v61_v24 = vpop.permute.xlu1 %60  ;;  %v59_v25 = vpop.permute.xlu0 %58 }
 0x18d   :  { %v62_v26 = vsel %vm44_vm0, %v59_v25, %v61_v24  ;;  %v63_v27 = vsel %vm44_vm0, %v61_v24, %v59_v25  ;;  %vm145_vm0 = vcmp.eq.s32.totalorder %v143_v53, 1 }
 0x18e   :  { %v78_v28 = vsel %vm76_vm3, %v63_v27, %v57_v15  ;;  %v77_v29 = vsel %vm75_vm4, %v62_v26, %v56_v14 }
 0x18f   :  { %81 = vrot.lane.b32.xlu1 %v78_v28, %s253_s5  ;;  %79 = vrot.lane.b32.xlu0 %v77_v29, %s253_s5 }
 0x201   :  { %v82_v34 = vpop.permute.xlu1 %81  ;;  %v80_v35 = vpop.permute.xlu0 %79 }
 0x202   :  { %v84_v36 = vsel %vm83_vm6, %v80_v35, %v82_v34  ;;  %v85_v37 = vsel %vm83_vm6, %v82_v34, %v80_v35 }
 0x203   :  { %v101_v38 = vsel %vm99_vm7, %v85_v37, %v78_v28  ;;  %v100_v39 = vsel %vm98_vm8, %v84_v36, %v77_v29 }
 0x204   :  { %104 = vrot.lane.b32.xlu1 %v101_v38, %s254_s6  ;;  %102 = vrot.lane.b32.xlu0 %v100_v39, %s254_s6 }
 0x276   :  { %v105_v44 = vpop.permute.xlu1 %104  ;;  %v103_v45 = vpop.permute.xlu0 %102 }
 0x277   :  { %v107_v46 = vsel %vm106_vm10, %v103_v45, %v105_v44  ;;  %v108_v47 = vsel %vm106_vm10, %v105_v44, %v103_v45 }
 0x278   :  { %v124_v48 = vsel %vm122_vm11, %v108_v47, %v101_v38  ;;  %v123_v49 = vsel %vm121_vm12, %v107_v46, %v100_v39 }
 0x279   :  { %127 = vrot.lane.b32.xlu1 %v124_v48, %s255_s7  ;;  %125 = vrot.lane.b32.xlu0 %v123_v49, %s255_s7 }
 0x2eb   :  { %v128_v54 = vpop.permute.xlu1 %127  ;;  %v126_v55 = vpop.permute.xlu0 %125 }
 0x2ec   :  { %v130_v56 = vsel %vm129_vm14, %v126_v55, %v128_v54  ;;  %v131_v57 = vsel %vm129_vm14, %v128_v54, %v126_v55 }
 0x2ed   :  { %v146_v58 = vsel %vm144_vm15, %v130_v56, %v123_v49  ;;  %v147_v59 = vsel %vm145_vm0, %v131_v57, %v124_v48 }
 0x2ee   :  { %148 = vst [vmem:[#allocation7] sm:$0xff] %v146_v58  ;;  %150 = vst.msk [vmem:[#allocation7 + $0x8] sm:$0xff] %vm149_vm1, %v147_v59 }
 0x2ef   :  { %231 = shalt.err (!%p228_p6)
}
 0x2f0   :  { %s232_s13 = scalar_lea.hbm %s325_s2, 256 }
 0x2f1   :  { %p233_p7 = scmp.ne.s32.totalorder %s325_s2, %s232_s13  ;;  %p236_p8 = scmp.lt.u32.totalorder %s232_s13, %s325_s2 }
 0x2f3   :  { %p238_p9 = pnand %p236_p8, %p233_p7 }
 0x2f5   :  { %241 = shalt.err (!%p238_p9)
}
 0x2f6   :  { %160 = dma.vmem_to_hbm [thread:$0]  %s158_s9, 256, %s325_s2, [#allocation4]  }
 0x2f7   :  { %246 = dma.done.wait [#allocation4], 256  }
 0x2f8   :  { %247 = vsyncadd [#allocation4], 4294967040 }
 0x2f9   :  { %164 = vsyncpa [#allocation3], 1 }
 0x2fa   :  { %165 = vsyncpa [#allocation6], 1 }
 0x2fb   :  { %166 = vsyncpa [#allocation4], 1 }

</bundles_post_ra>
